<compile_context>
chip_gen: v6e
topology: v6e:2x2x1
jax: 0.10.0
libtpu: 0.0.40
codegen_flags: <defaults>
</compile_context>

<pallas_src>
import functools

import jax
import jax.numpy as jnp
from jax.experimental import pallas as pl
from jax.experimental.pallas import tpu as pltpu


# ----------------------------------------------------------------------------
# Kernel
# ----------------------------------------------------------------------------
def value_kernel(xt_ref, w1_ref, b1_ref, w2_ref, b2_ref, w3_ref, b3_ref, o_ref,
                 *, ew_dtype):
    # Transposed layout: features on sublanes, batch on lanes.
    xt = xt_ref[...]                                               # (S, TB)

    # fc1: MXU matmul with f32 accumulation; bias+tanh in ew_dtype
    # (bf16 on v6e/v7x -> EUP throughput ~2x; f32 on v5e).
    acc1 = jnp.dot(w1_ref[...], xt, preferred_element_type=jnp.float32)  # (H, TB)
    h1 = jnp.tanh(acc1.astype(ew_dtype) + b1_ref[...])             # (H, TB) ew

    # fc2
    acc2 = jnp.dot(w2_ref[...], h1.astype(w2_ref.dtype),
                   preferred_element_type=jnp.float32)             # (H, TB)
    h2 = jnp.tanh(acc2.astype(ew_dtype) + b2_ref[...])             # (H, TB) ew

    # fc3 value head: VPU multiply + sublane (XLU) reduction in f32; avoids an
    # N=1 MXU matmul and keeps the output lane-dense (1, TB).
    v = (jnp.sum(h2.astype(jnp.float32) * w3_ref[...], axis=0, keepdims=True)
         + b3_ref[...])
    o_ref[...] = v.astype(o_ref.dtype)


# ----------------------------------------------------------------------------
# Wrapper
# ----------------------------------------------------------------------------
def _round_up(n, m):
    return pl.cdiv(n, m) * m


def _device_kind():
    try:
        return jax.devices()[0].device_kind.lower()
    except Exception:
        return ""


def _bf16_elementwise_supported():
    # v6e / v7x have bf16-capable VPU/EUP; v5e and earlier do not.
    kind = _device_kind()
    return any(tag in kind for tag in ("v6", "v7", "7x"))


def _multi_core_chip():
    # v7x has 2 TensorCores per chip.
    kind = _device_kind()
    return ("v7" in kind) or ("7x" in kind)


def _default_ew_dtype(matmul_dtype):
    if matmul_dtype == jnp.bfloat16 and _bf16_elementwise_supported():
        return jnp.bfloat16
    return jnp.float32


@functools.partial(jax.jit, static_argnames=("tb", "matmul_dtype", "ew_dtype"))
def _value_forward_impl(x, params, *, tb, matmul_dtype, ew_dtype):
    w1, b1, w2, b2, w3, b3 = params
    B, S = x.shape

    Bp = int(_round_up(B, tb))
    num_tiles = Bp // tb

    # Wrapper-side layout plumbing: cast FIRST (halves transpose/pad bytes on
    # the bf16 path), then transpose + zero-pad the batch to Bp lanes.
    xt = jnp.pad(x.astype(matmul_dtype).T, ((0, 0), (0, Bp - B)))   # (S, Bp)
    w1_mm = w1.astype(matmul_dtype)                                 # (H, S)
    w2_mm = w2.astype(matmul_dtype)                                 # (H, H)
    b1_ew = b1.astype(ew_dtype)                                     # (H, 1)
    b2_ew = b2.astype(ew_dtype)                                     # (H, 1)

    const = lambda a: pl.BlockSpec(a.shape, lambda i: (0, 0))       # VMEM-resident

    out = pl.pallas_call(
        functools.partial(value_kernel, ew_dtype=ew_dtype),
        out_shape=jax.ShapeDtypeStruct((1, Bp), jnp.float32),
        grid=(num_tiles,),
        in_specs=[
            pl.BlockSpec((S, tb), lambda i: (0, i)),   # activation tile
            const(w1_mm), const(b1_ew),
            const(w2_mm), const(b2_ew),
            const(w3), const(b3),
        ],
        # (1, tb) block inside (1, Bp): sublane block dim == full extent,
        # lane-dense contiguous writeback each step.
        out_specs=pl.BlockSpec((1, tb), lambda i: (0, i)),
        compiler_params=pltpu.CompilerParams(
            dimension_semantics=("parallel",)),
    )(xt, w1_mm, b1_ew, w2_mm, b2_ew, w3, b3)

    return out[0, :B].reshape(B, 1)


def value_forward(x, params, *, tb=1024, matmul_dtype=jnp.bfloat16,
                  ew_dtype=None):
    """x: (B, state_space) float32 -> (B, 1) float32 critic value."""
    B = x.shape[0]
    if ew_dtype is None:
        ew_dtype = _default_ew_dtype(matmul_dtype)

    # Batch tile: lane-dense (multiple of 128), clamped for tiny batches.
    lane_b = int(_round_up(B, 128))
    tb = int(min(_round_up(int(tb), 128), lane_b))
    # v7x: guarantee >= 2 parallel tiles so both TensorCores are used.
    if _multi_core_chip() and lane_b >= 256:
        tb = int(min(tb, max(128, (lane_b // 2) // 128 * 128)))

    return _value_forward_impl(x, params, tb=tb, matmul_dtype=matmul_dtype,
                               ew_dtype=ew_dtype)


# ----------------------------------------------------------------------------
# Params / reference
# ----------------------------------------------------------------------------
def init_value_params(key, state_space, hidden=64):
    """Matches torch init: normal_(weight) (std=1), zeros_(bias).
    Weights kept in PyTorch (out_features, in_features) layout; biases and the
    fc3 weight are stored as columns for the transposed kernel math."""
    k1, k2, k3 = jax.random.split(key, 3)
    w1 = jax.random.normal(k1, (hidden, state_space), dtype=jnp.float32)
    b1 = jnp.zeros((hidden, 1), dtype=jnp.float32)
    w2 = jax.random.normal(k2, (hidden, hidden), dtype=jnp.float32)
    b2 = jnp.zeros((hidden, 1), dtype=jnp.float32)
    w3 = jax.random.normal(k3, (hidden, 1), dtype=jnp.float32)  # (1, hidden).T
    b3 = jnp.zeros((1, 1), dtype=jnp.float32)
    return (w1, b1, w2, b2, w3, b3)


def value_ref(x, params, *, matmul_dtype=jnp.float32, ew_dtype=jnp.float32,
              precision=None):
    """Pure-JAX reference (batch-major), mirroring the kernel's dtypes."""
    w1, b1, w2, b2, w3, b3 = params
    a1 = jnp.dot(x.astype(matmul_dtype), w1.T.astype(matmul_dtype),
                 preferred_element_type=jnp.float32, precision=precision)
    h1 = jnp.tanh(a1.astype(ew_dtype) + b1.T.astype(ew_dtype))
    a2 = jnp.dot(h1.astype(matmul_dtype), w2.T.astype(matmul_dtype),
                 preferred_element_type=jnp.float32, precision=precision)
    h2 = jnp.tanh(a2.astype(ew_dtype) + b2.T.astype(ew_dtype))
    return jnp.dot(h2.astype(jnp.float32), w3,
                   preferred_element_type=jnp.float32,
                   precision=jax.lax.Precision.HIGHEST) + b3.T


# ----------------------------------------------------------------------------
# Self-test
# ----------------------------------------------------------------------------
if __name__ == "__main__":
    key = jax.random.PRNGKey(0)
    k_params, k_x1, k_x2 = jax.random.split(key, 3)

    state_space, hidden = 8, 64
    params = init_value_params(k_params, state_space, hidden)
    ew_bf16 = _default_ew_dtype(jnp.bfloat16)

    # 1) Default (bf16 MXU) path, tiny RL-style batch -> single 128-lane tile.
    x_small = jax.random.normal(k_x1, (8, state_space), dtype=jnp.float32)
    out_small = jax.block_until_ready(value_forward(x_small, params))
    ref_small = value_ref(x_small, params, matmul_dtype=jnp.bfloat16,
                          ew_dtype=ew_bf16)
    assert out_small.shape == (8, 1), out_small.shape
    assert jnp.allclose(out_small, ref_small, atol=5e-2, rtol=5e-2)

    # 2) Default (bf16) path, larger batch (padding + possible multi-tile).
    x_big = jax.random.normal(k_x2, (300, state_space), dtype=jnp.float32)
    out_big = jax.block_until_ready(value_forward(x_big, params))
    ref_big_bf16 = value_ref(x_big, params, matmul_dtype=jnp.bfloat16,
                             ew_dtype=ew_bf16)
    assert out_big.shape == (300, 1), out_big.shape
    assert jnp.allclose(out_big, ref_big_bf16, atol=5e-2, rtol=5e-2)

    # 3) Full-precision path (f32 MXU operands, f32 elementwise).
    out_f32 = jax.block_until_ready(
        value_forward(x_big, params, matmul_dtype=jnp.float32,
                      ew_dtype=jnp.float32))
    ref_f32 = value_ref(x_big, params, matmul_dtype=jnp.float32,
                        ew_dtype=jnp.float32,
                        precision=jax.lax.Precision.HIGHEST)
    assert jnp.allclose(out_f32, ref_f32, atol=5e-3, rtol=5e-3)

    # 4) Force a multi-tile grid (tb=128 -> 3 tiles for Bp=384) on any chip.
    out_tiled = jax.block_until_ready(value_forward(x_big, params, tb=128))
    assert jnp.allclose(out_tiled, ref_big_bf16, atol=5e-2, rtol=5e-2)

    print("KERNEL_OK")
</pallas_src>

<mosaic_0001>
module attributes {stable_mosaic.version = 11 : i64} {
  func.func @value_kernel(%arg0: i32, %arg1: memref<8x128xbf16, #tpu.memory_space<vmem>>, %arg2: memref<64x8xbf16, #tpu.memory_space<vmem>>, %arg3: memref<64x1xf32, #tpu.memory_space<vmem>>, %arg4: memref<64x64xbf16, #tpu.memory_space<vmem>>, %arg5: memref<64x1xf32, #tpu.memory_space<vmem>>, %arg6: memref<64x1xf32, #tpu.memory_space<vmem>>, %arg7: memref<1x1xf32, #tpu.memory_space<vmem>>, %arg8: memref<1x128xf32, #tpu.memory_space<vmem>>) attributes {dimension_semantics = [#tpu.dimension_semantics<parallel>], iteration_bounds = array<i64: 1>, scalar_prefetch = 0 : i64, scratch_operands = 0 : i64, tpu.core_type = #tpu.core_type<tc>, window_params = [{transform_indices = @transform_0, window_bounds = array<i64: 8, 128>}, {pipeline_mode = #tpu.pipeline_mode<synchronous>, transform_indices = @transform_1, window_bounds = array<i64: 64, 8>}, {pipeline_mode = #tpu.pipeline_mode<synchronous>, transform_indices = @transform_2, window_bounds = array<i64: 64, 1>}, {pipeline_mode = #tpu.pipeline_mode<synchronous>, transform_indices = @transform_3, window_bounds = array<i64: 64, 64>}, {pipeline_mode = #tpu.pipeline_mode<synchronous>, transform_indices = @transform_4, window_bounds = array<i64: 64, 1>}, {pipeline_mode = #tpu.pipeline_mode<synchronous>, transform_indices = @transform_5, window_bounds = array<i64: 64, 1>}, {pipeline_mode = #tpu.pipeline_mode<synchronous>, transform_indices = @transform_6, window_bounds = array<i64: 1, 1>}, {transform_indices = @transform_7, window_bounds = array<i64: 1, 128>}]} {
    %c0 = arith.constant 0 : index
    %c0_0 = arith.constant 0 : index
    %0 = vector.load %arg1[%c0, %c0_0] : memref<8x128xbf16, #tpu.memory_space<vmem>>, vector<8x128xbf16>
    %c0_1 = arith.constant 0 : index
    %c0_2 = arith.constant 0 : index
    %1 = vector.load %arg2[%c0_1, %c0_2] : memref<64x8xbf16, #tpu.memory_space<vmem>>, vector<64x8xbf16>
    %cst = arith.constant dense<0.000000e+00> : vector<64x128xf32>
    %2 = tpu.matmul %1, %0, %cst {dimension_numbers = #tpu.dot_dimension_numbers<[1], [0], [0], [1], [0, 0, 1, 1], [], []>} : vector<64x8xbf16>, vector<8x128xbf16>, vector<64x128xf32> -> vector<64x128xf32>
    %c0_3 = arith.constant 0 : index
    %c0_4 = arith.constant 0 : index
    %3 = vector.load %arg3[%c0_3, %c0_4] : memref<64x1xf32, #tpu.memory_space<vmem>>, vector<64x1xf32>
    %4 = vector.broadcast %3 : vector<64x1xf32> to vector<64x128xf32>
    %5 = arith.addf %2, %4 : vector<64x128xf32>
    %6 = math.tanh %5 : vector<64x128xf32>
    %c0_5 = arith.constant 0 : index
    %c0_6 = arith.constant 0 : index
    %7 = vector.load %arg4[%c0_5, %c0_6] : memref<64x64xbf16, #tpu.memory_space<vmem>>, vector<64x64xbf16>
    %8 = arith.truncf %6 : vector<64x128xf32> to vector<64x128xbf16>
    %cst_7 = arith.constant dense<0.000000e+00> : vector<64x128xf32>
    %9 = tpu.matmul %7, %8, %cst_7 {dimension_numbers = #tpu.dot_dimension_numbers<[1], [0], [0], [1], [0, 0, 1, 1], [], []>} : vector<64x64xbf16>, vector<64x128xbf16>, vector<64x128xf32> -> vector<64x128xf32>
    %c0_8 = arith.constant 0 : index
    %c0_9 = arith.constant 0 : index
    %10 = vector.load %arg5[%c0_8, %c0_9] : memref<64x1xf32, #tpu.memory_space<vmem>>, vector<64x1xf32>
    %11 = vector.broadcast %10 : vector<64x1xf32> to vector<64x128xf32>
    %12 = arith.addf %9, %11 : vector<64x128xf32>
    %13 = math.tanh %12 : vector<64x128xf32>
    %c0_10 = arith.constant 0 : index
    %c0_11 = arith.constant 0 : index
    %14 = vector.load %arg6[%c0_10, %c0_11] : memref<64x1xf32, #tpu.memory_space<vmem>>, vector<64x1xf32>
    %15 = vector.broadcast %14 : vector<64x1xf32> to vector<64x128xf32>
    %16 = arith.mulf %13, %15 : vector<64x128xf32>
    %cst_12 = arith.constant dense<0.000000e+00> : vector<128xf32>
    %17 = vector.multi_reduction <add>, %16, %cst_12 [0] : vector<64x128xf32> to vector<128xf32>
    %18 = vector.shape_cast %17 : vector<128xf32> to vector<1x128xf32>
    %c0_13 = arith.constant 0 : index
    %c0_14 = arith.constant 0 : index
    %19 = vector.load %arg7[%c0_13, %c0_14] : memref<1x1xf32, #tpu.memory_space<vmem>>, vector<1x1xf32>
    %20 = vector.broadcast %19 : vector<1x1xf32> to vector<1x128xf32>
    %21 = arith.addf %18, %20 : vector<1x128xf32>
    %c0_15 = arith.constant 0 : index
    %c0_16 = arith.constant 0 : index
    %22 = vector.load %arg8[%c0_15, %c0_16] : memref<1x128xf32, #tpu.memory_space<vmem>>, vector<1x128xf32>
    tpu.vector_store %arg8[%c0_15, %c0_16], %21 {strides = array<i32>} : memref<1x128xf32, #tpu.memory_space<vmem>>, vector<1x128xf32>,
    return
  }
  func.func @transform_0(%arg0: i32) -> (i32, i32) {
    %c0_i32 = arith.constant 0 : i32
    %c0_i32_0 = arith.constant 0 : i32
    return %c0_i32, %arg0 : i32, i32
  }
  func.func @transform_1(%arg0: i32) -> (i32, i32) {
    %c0_i32 = arith.constant 0 : i32
    %c0_i32_0 = arith.constant 0 : i32
    %c0_i32_1 = arith.constant 0 : i32
    return %c0_i32, %c0_i32_0 : i32, i32
  }
  func.func @transform_2(%arg0: i32) -> (i32, i32) {
    %c0_i32 = arith.constant 0 : i32
    %c0_i32_0 = arith.constant 0 : i32
    %c0_i32_1 = arith.constant 0 : i32
    return %c0_i32, %c0_i32_0 : i32, i32
  }
  func.func @transform_3(%arg0: i32) -> (i32, i32) {
    %c0_i32 = arith.constant 0 : i32
    %c0_i32_0 = arith.constant 0 : i32
    %c0_i32_1 = arith.constant 0 : i32
    return %c0_i32, %c0_i32_0 : i32, i32
  }
  func.func @transform_4(%arg0: i32) -> (i32, i32) {
    %c0_i32 = arith.constant 0 : i32
    %c0_i32_0 = arith.constant 0 : i32
    %c0_i32_1 = arith.constant 0 : i32
    return %c0_i32, %c0_i32_0 : i32, i32
  }
  func.func @transform_5(%arg0: i32) -> (i32, i32) {
    %c0_i32 = arith.constant 0 : i32
    %c0_i32_0 = arith.constant 0 : i32
    %c0_i32_1 = arith.constant 0 : i32
    return %c0_i32, %c0_i32_0 : i32, i32
  }
  func.func @transform_6(%arg0: i32) -> (i32, i32) {
    %c0_i32 = arith.constant 0 : i32
    %c0_i32_0 = arith.constant 0 : i32
    %c0_i32_1 = arith.constant 0 : i32
    return %c0_i32, %c0_i32_0 : i32, i32
  }
  func.func @transform_7(%arg0: i32) -> (i32, i32) {
    %c0_i32 = arith.constant 0 : i32
    %c0_i32_0 = arith.constant 0 : i32
    return %c0_i32, %arg0 : i32, i32
  }
}

</mosaic_0001>

<bundles_post_ra>
// kernel: _value_forward_impl.1
= control target key start
LH: loop header
LB: loop body
LE: loop exit
PB: predicated region body
PF: predicated region fallthrough
CT: control target
= control target key end

     0   :  { %vm119_vm0 = vcmask 1043456   ;;  %vm106_vm1 = vcmask 64512   ;;  %v554_v1 = vmov 0   ;;  %vm276_vm2 = vcmask 523264   ;;  %s708_s0 = inlined_call_operand.vmem [shape: bf16[8,128], index: 0, kind: input, shape index: {}]   ;;  %s709_s1 = inlined_call_operand.vmem [shape: bf16[64,8], index: 1, kind: input, shape index: {}]   ;;  %s710_s6 = inlined_call_operand.<no memory space> [shape: f32[1,1], index: 6, kind: input, shape index: {}]   ;;  %s711_s2 = inlined_call_operand.vmem [shape: f32[64,1], index: 2, kind: input, shape index: {}]   ;;  %s712_s4 = inlined_call_operand.vmem [shape: f32[64,1], index: 4, kind: input, shape index: {}]   ;;  %s713_s5 = inlined_call_operand.vmem [shape: f32[64,1], index: 5, kind: input, shape index: {}]   ;;  %s714_s3 = inlined_call_operand.vmem [shape: bf16[64,64], index: 3, kind: input, shape index: {}]   ;;  %s715_s7 = inlined_call_operand.vmem [shape: f32[1,128], index: 7, kind: output, shape index: {}]  }
   0x1   :  { %v29_v0 = vld [vmem:[%s708_s0] sm:$0xf]  ;;  %512 = vset.pattern.permute.xlu0 %v554_v1  ;;  %513 = vset.pattern.permute.xlu1 %v554_v1  ;;  %v12_v2 = vstv %s710_s6  ;;  %v515_v5 = vld [vmem:[%s709_s1 + $0x8] sm:$0xff]   ;;  %v516_v6 = vld [vmem:[%s709_s1 + $0x10] sm:$0xff]  }
   0x2   :  { %510 = vmatprep.subr.msk.bf16.mxu0 %vm119_vm0, %v29_v0  ;;  %v121_v3 = vsel %vm119_vm0, %v29_v0, 0  ;;  %v514_v4 = vld [vmem:[%s709_s1] sm:$0xff]   ;;  %13 = vst [vmem:[#allocation2] sm:$0x1] %v12_v2  ;;  %v44_v7 = vld [vmem:[%s711_s2 + $0x30] sm:$0xff]  ;;  %v45_v9 = vld [vmem:[%s711_s2 + $0x38] sm:$0xff] }
   0x3   :  { %477 = vmatpush3.bf16.msra.mxu0 %v121_v3  ;;  %478 = vmatprep.mubr.msk.bf16.mxu0 %vm106_vm1, %v514_v4  ;;  %v42_v8 = vld [vmem:[%s711_s2 + $0x20] sm:$0xff]  ;;  %v43_v10 = vld [vmem:[%s711_s2 + $0x28] sm:$0xff]  ;;  %v517_v11 = vld [vmem:[%s709_s1 + $0x18] sm:$0xff]  }
   0x4   :  { %78 = vperm.xlu0 %512, %v44_v7   ;;  %68 = vperm.xlu1 %513, %v42_v8   ;;  %v40_v12 = vld [vmem:[%s711_s2 + $0x10] sm:$0xff]  ;;  %v41_v13 = vld [vmem:[%s711_s2 + $0x18] sm:$0xff]  ;;  %v38_v14 = vld [vmem:[%s711_s2] sm:$0xff] }
   0x5   :  { %v39_v15 = vld [vmem:[%s711_s2 + $0x8] sm:$0xff]  ;;  %v208_v16 = vld [vmem:[%s712_s4] sm:$0xff]  ;;  %v210_v18 = vld [vmem:[%s712_s4 + $0x10] sm:$0xff] }
   0x6   :  { %479 = vmatmul.mubr.msk.bf16.vlgmr.msra.gmra.mxu0 %vm106_vm1, %v515_v5  ;;  %v209_v17 = vld [vmem:[%s712_s4 + $0x8] sm:$0xff]  ;;  %v211_v19 = vld [vmem:[%s712_s4 + $0x18] sm:$0xff]  ;;  %v212_v20 = vld [vmem:[%s712_s4 + $0x20] sm:$0xff] }
   0x7   :  { %482 = vmatprep.mubr.msk.bf16.mxu0 %vm106_vm1, %v516_v6  ;;  %v213_v21 = vld [vmem:[%s712_s4 + $0x28] sm:$0xff]  ;;  %v214_v22 = vld [vmem:[%s712_s4 + $0x30] sm:$0xff]  ;;  %v215_v23 = vld [vmem:[%s712_s4 + $0x38] sm:$0xff] }
   0x8   :  { %83 = vperm.xlu0 %512, %v45_v9   ;;  %73 = vperm.xlu1 %513, %v43_v10   ;;  %v362_v24 = vld [vmem:[%s713_s5] sm:$0xff]  ;;  %v363_v25 = vld [vmem:[%s713_s5 + $0x8] sm:$0xff]  ;;  %v364_v26 = vld [vmem:[%s713_s5 + $0x10] sm:$0xff] }
   0x9   :  { %v365_v27 = vld [vmem:[%s713_s5 + $0x18] sm:$0xff]  ;;  %v366_v28 = vld [vmem:[%s713_s5 + $0x20] sm:$0xff]  ;;  %v367_v29 = vld [vmem:[%s713_s5 + $0x28] sm:$0xff] }
   0xa   :  { %v368_v30 = vld [vmem:[%s713_s5 + $0x30] sm:$0xff]  ;;  %v369_v31 = vld [vmem:[%s713_s5 + $0x38] sm:$0xff]  ;;  %v431_v32 = vld [vmem:[#allocation2] sm:$0x1] }
   0xb   :  { %v518_v33 = vld [vmem:[%s714_s3] sm:$0xff]   ;;  %v519_v34 = vld [vmem:[%s714_s3 + $0x10] sm:$0xff]   ;;  %v520_v7 = vld [vmem:[%s714_s3 + $0x8] sm:$0xff]  }
   0xc   :  { %58 = vperm.xlu0 %512, %v40_v12   ;;  %63 = vperm.xlu1 %513, %v41_v13   ;;  %v521_v8 = vld [vmem:[%s714_s3 + $0x18] sm:$0xff]  }
   0xd   :  { %498 = vmatprep.mubr.msk.bf16.mxu1 %vm276_vm2, %v519_v34 }
   0xe   :  { %483 = vmatmul.mubr.msk.bf16.gmra.mxu0 %vm106_vm1, %v517_v11 }
   0xf   :  { %494 = vmatprep.mubr.msk.bf16.mxu0 %vm276_vm2, %v518_v33 }
  0x10   :  { %48 = vperm.xlu0 %512, %v38_v14   ;;  %53 = vperm.xlu1 %513, %v39_v15  }
  0x14   :  { %218 = vperm.xlu0 %512, %v208_v16   ;;  %223 = vperm.xlu1 %513, %v209_v17  }
  0x18   :  { %228 = vperm.xlu0 %512, %v210_v18   ;;  %233 = vperm.xlu1 %513, %v211_v19  }
  0x1c   :  { %238 = vperm.xlu0 %512, %v212_v20   ;;  %243 = vperm.xlu1 %513, %v213_v21  }
  0x20   :  { %248 = vperm.xlu0 %512, %v214_v22   ;;  %253 = vperm.xlu1 %513, %v215_v23  }
  0x24   :  { %372 = vperm.xlu0 %512, %v362_v24   ;;  %377 = vperm.xlu1 %513, %v363_v25  }
  0x28   :  { %382 = vperm.xlu0 %512, %v364_v26   ;;  %387 = vperm.xlu1 %513, %v365_v27  }
  0x2c   :  { %392 = vperm.xlu0 %512, %v366_v28   ;;  %397 = vperm.xlu1 %513, %v367_v29  }
  0x30   :  { %402 = vperm.xlu0 %512, %v368_v30   ;;  %407 = vperm.xlu1 %513, %v369_v31  }
  0x34   :  { %434 = vperm.xlu0 %512, %v431_v32  }
  0x7f   :  { %v69_v35 = vpop.permute.xlu1 %68  ;;  %v79_v37 = vpop.permute.xlu0 %78 }
  0x83   :  { %v74_v40 = vpop.permute.xlu1 %73  ;;  %v84_v42 = vpop.permute.xlu0 %83 }
  0x87   :  { %v64_v46 = vpop.permute.xlu1 %63  ;;  %v59_v50 = vpop.permute.xlu0 %58 }
  0x8b   :  { %v54_v55 = vpop.permute.xlu1 %53  ;;  %v49_v57 = vpop.permute.xlu0 %48 }
  0x8f   :  { %v219_v9 = vpop.permute.xlu0 %218  ;;  %v224_v10 = vpop.permute.xlu1 %223 }
  0x93   :  { %v229_v11 = vpop.permute.xlu0 %228  ;;  %v234_v12 = vpop.permute.xlu1 %233 }
  0x97   :  { %v239_v15 = vpop.permute.xlu0 %238  ;;  %v244_v18 = vpop.permute.xlu1 %243 }
  0x9b   :  { %v249_v26 = vpop.permute.xlu0 %248  ;;  %v254_v29 = vpop.permute.xlu1 %253 }
  0x9f   :  { %v373_v32 = vpop.permute.xlu0 %372  ;;  %v378_v34 = vpop.permute.xlu1 %377 }
  0xc6   :  { %v480_v36 = vpop.f32.mrf.mxu0 }
  0xc7   :  { %v166_v54 = vadd.f32 %v480_v36, %v59_v50  ;;  %v383_v36 = vpop.permute.xlu0 %382 }
  0xc8   :  { %v157_v38 = vpop.f32.mrf.mxu0 }
  0xc9   :  { %v158_v58 = vadd.f32 %v157_v38, %v49_v57 }
  0xca   :  { %v481_v39 = vpop.f32.mrf.mxu0 }
  0xcb   :  { %v169_v52 = vadd.f32 %v481_v39, %v64_v46  ;;  %v388_v39 = vpop.permute.xlu1 %387  ;;  %v393_v46 = vpop.permute.xlu0 %392 }
  0xcc   :  { %v160_v41 = vpop.f32.mrf.mxu0 }
  0xcd   :  { %v161_v56 = vadd.f32 %v160_v41, %v54_v55 }
  0xce   :  { %v484_v43 = vpop.f32.mrf.mxu0 }
  0xcf   :  { %v182_v44 = vadd.f32 %v484_v43, %v79_v37  ;;  %v398_v50 = vpop.permute.xlu1 %397  ;;  %v403_v57 = vpop.permute.xlu0 %402 }
  0xd0   :  { %v173_v45 = vpop.f32.mrf.mxu0 }
  0xd1   :  { %v174_v47 = vadd.f32 %v173_v45, %v69_v35  ;;  %522 = vtanh.f32 %v182_v44 }
  0xd2   :  { %v485_v48 = vpop.f32.mrf.mxu0 }
  0xd3   :  { %v185_v49 = vadd.f32 %v485_v48, %v84_v42 }
  0xd4   :  { %v176_v51 = vpop.f32.mrf.mxu0 }
  0xd5   :  { %524 = vtanh.f32 %v185_v49  ;;  %v177_v53 = vadd.f32 %v176_v51, %v74_v40 }
  0xd6   :  { %526 = vtanh.f32 %v174_v47 }
  0xd7   :  { %528 = vtanh.f32 %v177_v53 }
  0xd8   :  { %530 = vtanh.f32 %v169_v52 }
  0xd9   :  { %532 = vtanh.f32 %v166_v54 }
  0xda   :  { %534 = vtanh.f32 %v161_v56 }
  0xdb   :  { %536 = vtanh.f32 %v158_v58 }
  0xde   :  { %v523_v59 = vpop.eup %522 }
  0xe2   :  { %v525_v60 = vpop.eup %524 }
  0xe3   :  { %v527_v61 = vpop.eup %526  ;;  %v207_v62 = vpack.c.bf16 %v525_v60, %v523_v59  ;;  %v408_v60 = vpop.permute.xlu1 %407 }
  0xe4   :  { %v529_v63 = vpop.eup %528 }
  0xe5   :  { %486 = vmatprep.subr.bf16.mxu0 %v207_v62  ;;  %502 = vmatprep.subr.bf16.mxu1 %v207_v62  ;;  %v206_v0 = vpack.c.bf16 %v529_v63, %v527_v61  ;;  %v531_v1 = vpop.eup %530  ;;  %v437_v63 = vlaneseq }
  0xe6   :  { %487 = vmatpush3.bf16.msra.mxu0 %v207_v62  ;;  %506 = vmatpush3.bf16.msra.mxu1 %v207_v62  ;;  %v533_v2 = vpop.eup %532 }
  0xe7   :  { %488 = vmatprep.subr.bf16.mxu0 %v206_v0  ;;  %503 = vmatprep.subr.bf16.mxu1 %v206_v0  ;;  %v205_v3 = vpack.c.bf16 %v531_v1, %v533_v2  ;;  %v535_v4 = vpop.eup %534  ;;  %v438_v2 = vshrl.u32 %v437_v63, 7 }
  0xe8   :  { %v537_v5 = vpop.eup %536 }
  0xe9   :  { %v204_v6 = vpack.c.bf16 %v535_v4, %v537_v5  ;;  %v439_v5 = vsub.s32 0, %v438_v2 }
  0xea   :  { %489 = vmatpush3.bf16.msra.mxu0 %v206_v0  ;;  %507 = vmatpush3.bf16.msra.mxu1 %v206_v0 }
  0xeb   :  { %490 = vmatprep.subr.bf16.mxu0 %v205_v3  ;;  %504 = vmatprep.subr.bf16.mxu1 %v205_v3 }
  0xee   :  { %491 = vmatpush3.bf16.msra.mxu0 %v205_v3  ;;  %508 = vmatpush3.bf16.msra.mxu1 %v205_v3 }
  0xef   :  { %492 = vmatprep.subr.bf16.mxu0 %v204_v6  ;;  %505 = vmatprep.subr.bf16.mxu1 %v204_v6 }
  0xf2   :  { %493 = vmatpush3.bf16.msra.mxu0 %v204_v6  ;;  %509 = vmatpush3.bf16.msra.mxu1 %v204_v6 }
  0xf5   :  { %495 = vmatmul.mubr.msk.bf16.vlgmr.msra.gmra.mxu0 %vm276_vm2, %v520_v7  ;;  %499 = vmatmul.mubr.msk.bf16.vlgmr.msra.gmra.mxu1 %vm276_vm2, %v521_v8  ;;  %v435_v7 = vpop.permute.xlu0 %434 }
 0x1b5   :  { %v496_v13 = vpop.f32.mrf.mxu0  ;;  %v500_v14 = vpop.f32.mrf.mxu1 }
 0x1b6   :  { %v332_v20 = vadd.f32 %v496_v13, %v229_v11  ;;  %v348_v31 = vadd.f32 %v500_v14, %v249_v26 }
 0x1b7   :  { %v323_v16 = vpop.f32.mrf.mxu0  ;;  %v339_v17 = vpop.f32.mrf.mxu1 }
 0x1b8   :  { %v324_v19 = vadd.f32 %v323_v16, %v219_v9  ;;  %v340_v28 = vadd.f32 %v339_v17, %v239_v15  ;;  %v440_v9 = vrot.slane %v435_v7, %v439_v5 }
 0x1b9   :  { %v497_v21 = vpop.f32.mrf.mxu0  ;;  %v501_v22 = vpop.f32.mrf.mxu1 }
 0x1ba   :  { %538 = vtanh.f32 %v324_v19  ;;  %v335_v24 = vadd.f32 %v497_v21, %v234_v12  ;;  %v351_v33 = vadd.f32 %v501_v22, %v254_v29 }
 0x1bb   :  { %v326_v23 = vpop.f32.mrf.mxu0  ;;  %540 = vtanh.f32 %v332_v20  ;;  %v342_v27 = vpop.f32.mrf.mxu1 }
 0x1bc   :  { %v327_v25 = vadd.f32 %v326_v23, %v224_v10  ;;  %v343_v30 = vadd.f32 %v342_v27, %v244_v18 }
 0x1be   :  { %542 = vtanh.f32 %v327_v25 }
 0x1bf   :  { %544 = vtanh.f32 %v335_v24 }
 0x1c0   :  { %546 = vtanh.f32 %v340_v28 }
 0x1c1   :  { %548 = vtanh.f32 %v343_v30 }
 0x1c2   :  { %550 = vtanh.f32 %v348_v31 }
 0x1c3   :  { %552 = vtanh.f32 %v351_v33 }
 0x1c7   :  { %v539_v35 = vpop.eup %538 }
 0x1c8   :  { %v541_v37 = vpop.eup %540  ;;  %v410_v40 = vmul.f32 %v539_v35, %v373_v32 }
 0x1c9   :  { %v412_v43 = vmul.f32 %v541_v37, %v383_v36 }
 0x1cb   :  { %v543_v38 = vpop.eup %542 }
 0x1cc   :  { %v411_v41 = vmul.f32 %v543_v38, %v378_v34  ;;  %v545_v42 = vpop.eup %544 }
 0x1cd   :  { %v547_v45 = vpop.eup %546  ;;  %v413_v47 = vmul.f32 %v545_v42, %v388_v39 }
 0x1ce   :  { %v418_v44 = vadd.f32 %v411_v41, %v410_v40  ;;  %v549_v49 = vpop.eup %548  ;;  %v414_v51 = vmul.f32 %v547_v45, %v393_v46 }
 0x1cf   :  { %v551_v53 = vpop.eup %550  ;;  %v415_v54 = vmul.f32 %v549_v49, %v398_v50 }
 0x1d0   :  { %v419_v48 = vadd.f32 %v418_v44, %v412_v43  ;;  %v553_v56 = vpop.eup %552  ;;  %v416_v58 = vmul.f32 %v551_v53, %v403_v57 }
 0x1d1   :  { %v417_v61 = vmul.f32 %v553_v56, %v408_v60 }
 0x1d2   :  { %v420_v52 = vadd.f32 %v419_v48, %v413_v47 }
 0x1d4   :  { %v421_v55 = vadd.f32 %v420_v52, %v414_v51 }
 0x1d6   :  { %v422_v59 = vadd.f32 %v421_v55, %v415_v54 }
 0x1d8   :  { %v423_v62 = vadd.f32 %v422_v59, %v416_v58 }
 0x1da   :  { %v424_v0 = vadd.f32 %v423_v62, %v417_v61 }
 0x1dc   :  { %v425_v1 = vrot.slane %v424_v0, 4 }
 0x1de   :  { %v426_v3 = vadd.f32 %v425_v1, %v424_v0 }
 0x1e0   :  { %v427_v4 = vrot.slane %v426_v3, 2 }
 0x1e2   :  { %v428_v6 = vadd.f32 %v427_v4, %v426_v3 }
 0x1e4   :  { %v429_v8 = vrot.slane %v428_v6, 1 }
 0x1e6   :  { %v430_v10 = vadd.f32 %v429_v8, %v428_v6 }
 0x1e8   :  { %v441_v11 = vadd.f32 %v440_v9, %v430_v10 }
 0x1ea   :  { %442 = vst [vmem:[%s715_s7] sm:$0x1] %v441_v11 }

</bundles_post_ra>
